<compile_context>
chip_gen: v7x
topology: tpu7x:2x2x1
jax: 0.10.0
libtpu: 0.0.40
codegen_flags: <defaults>
</compile_context>

<pallas_src>
import functools

import jax
import jax.numpy as jnp
from jax import lax
from jax.experimental import pallas as pl
from jax.experimental.pallas import tpu as pltpu


def _round_up(x, m):
    return (x + m - 1) // m * m


def _conv_stats_kernel(w_ref, p_ref, y_ref, s1_ref, s2_ref):
    # w_ref: (Co8, Kd_pad) bf16 weights (VMEM-resident), p_ref: (Kd_pad, TM) bf16 patches.
    y = jnp.dot(w_ref[...], p_ref[...], preferred_element_type=jnp.float32)  # (Co8, TM) f32
    y_ref[...] = y
    # Per-tile BatchNorm partial statistics: per-channel sum / sum-of-squares.
    # Cross-lane reduce -> XLU; broadcast to 128 lanes for an unmasked store.
    s1 = jnp.sum(y, axis=1, keepdims=True)        # (Co8, 1)
    s2 = jnp.sum(y * y, axis=1, keepdims=True)    # (Co8, 1)
    s1_ref[...] = jnp.broadcast_to(s1, s1_ref.shape)
    s2_ref[...] = jnp.broadcast_to(s2, s2_ref.shape)


def _bn_lrelu_kernel(y_ref, scale_ref, shift_ref, o_ref, *, slope):
    # Folded BatchNorm affine (per-channel scale/shift broadcast along lanes) + LeakyReLU.
    t = y_ref[...] * scale_ref[...] + shift_ref[...]
    o_ref[...] = jnp.where(t > 0, t, slope * t)


def conv3d_block(x, w, b, gamma, beta, *, eps=1e-5, slope=0.2, tm=2048):
    """Conv3d(stride=1, pad=0, dil=1, groups=1) + BatchNorm3d(batch stats) + LeakyReLU.

    x: (N, Cin, D, H, W) f32; w: (Cout, Cin, K, K, K); b/gamma/beta: (Cout,).
    Returns (N, Cout, Do, Ho, Wo) f32.
    """
    del b  # conv bias is exactly cancelled by the train-mode BN mean subtraction
    N, Cin, D, H, W = x.shape
    Cout, Cin_w, K, _, _ = w.shape
    assert Cin_w == Cin
    Do, Ho, Wo = D - K + 1, H - K + 1, W - K + 1
    M = N * Do * Ho * Wo                  # spatial positions -> lane axis
    Kd = Cin * K * K * K                  # contraction axis

    Co8 = _round_up(Cout, 8)              # sublane-aligned channel axis
    Kd_pad = _round_up(Kd, 16)            # bf16 sublane packing

    # Balanced, lane-aligned M-tiling (keeps padding < G*128 even for awkward M).
    m128 = _round_up(M, 128)
    tm = max(128, min(_round_up(tm, 128), m128))
    G = -(-m128 // tm)
    tm = _round_up(-(-m128 // G), 128)
    M_pad = G * tm

    # ---- im2col, channel/tap-major (wrapper glue; bf16 halves the blow-up) ----
    xb = x.astype(jnp.bfloat16)
    slices = []
    for kd in range(K):
        for kh in range(K):
            for kw in range(K):
                slices.append(xb[:, :, kd:kd + Do, kh:kh + Ho, kw:kw + Wo])
    p = jnp.stack(slices, axis=2)             # (N, Cin, K^3, Do, Ho, Wo)
    p = p.transpose(1, 2, 0, 3, 4, 5)         # (Cin, K^3, N, Do, Ho, Wo)
    p = p.reshape(Kd, M)
    p = jnp.pad(p, ((0, Kd_pad - Kd), (0, M_pad - M)))   # zero cols contribute 0 to stats

    w_mat = w.reshape(Cout, Kd).astype(jnp.float32)      # (Cout, Kd), (Cin, kd, kh, kw) order
    w_mat = jnp.pad(w_mat, ((0, Co8 - Cout), (0, Kd_pad - Kd))).astype(jnp.bfloat16)

    cparams = pltpu.CompilerParams(
        dimension_semantics=("parallel",),
        vmem_limit_bytes=32 * 1024 * 1024,
    )

    # ---- pass 1: conv matmul + per-tile BN partial sums ----
    cost1 = pl.CostEstimate(
        flops=2 * Co8 * Kd_pad * M_pad + 3 * Co8 * M_pad,
        transcendentals=0,
        bytes_accessed=(Kd_pad * M_pad * 2 + Co8 * Kd_pad * 2
                        + Co8 * M_pad * 4 + 2 * G * Co8 * 128 * 4),
    )
    y, s1, s2 = pl.pallas_call(
        _conv_stats_kernel,
        out_shape=(
            jax.ShapeDtypeStruct((Co8, M_pad), jnp.float32),
            jax.ShapeDtypeStruct((G * Co8, 128), jnp.float32),
            jax.ShapeDtypeStruct((G * Co8, 128), jnp.float32),
        ),
        grid=(G,),
        in_specs=[
            pl.BlockSpec((Co8, Kd_pad), lambda i: (0, 0)),   # weights resident in VMEM
            pl.BlockSpec((Kd_pad, tm), lambda i: (0, i)),
        ],
        out_specs=(
            pl.BlockSpec((Co8, tm), lambda i: (0, i)),
            pl.BlockSpec((Co8, 128), lambda i: (i, 0)),
            pl.BlockSpec((Co8, 128), lambda i: (i, 0)),
        ),
        compiler_params=cparams,
        cost_estimate=cost1,
    )(w_mat, p)

    # ---- batch statistics + folded BN affine (tiny, plain JAX) ----
    m_f = jnp.float32(M)
    total = s1.reshape(G, Co8, 128)[:, :, 0].sum(axis=0)       # per-channel sum over all M
    total_sq = s2.reshape(G, Co8, 128)[:, :, 0].sum(axis=0)    # per-channel sum of squares
    mean = total / m_f
    var = jnp.maximum(total_sq / m_f - mean * mean, 0.0)       # biased (train-mode) variance
    gamma_pad = jnp.pad(gamma.astype(jnp.float32), (0, Co8 - Cout))
    beta_pad = jnp.pad(beta.astype(jnp.float32), (0, Co8 - Cout))
    scale = gamma_pad * lax.rsqrt(var + eps)                   # padded channels -> scale 0
    shift = beta_pad - mean * scale
    scale = scale.reshape(Co8, 1)
    shift = shift.reshape(Co8, 1)

    # ---- pass 2: fused normalize + LeakyReLU on (Co8, TM) tiles ----
    cost2 = pl.CostEstimate(
        flops=3 * Co8 * M_pad,
        transcendentals=0,
        bytes_accessed=2 * Co8 * M_pad * 4 + 2 * Co8 * 4,
    )
    out = pl.pallas_call(
        functools.partial(_bn_lrelu_kernel, slope=slope),
        out_shape=jax.ShapeDtypeStruct((Co8, M_pad), jnp.float32),
        grid=(G,),
        in_specs=[
            pl.BlockSpec((Co8, tm), lambda i: (0, i)),
            pl.BlockSpec((Co8, 1), lambda i: (0, 0)),
            pl.BlockSpec((Co8, 1), lambda i: (0, 0)),
        ],
        out_specs=pl.BlockSpec((Co8, tm), lambda i: (0, i)),
        compiler_params=cparams,
        cost_estimate=cost2,
    )(y, scale, shift)

    # Strip padding, back to PyTorch NCDHW output layout.
    out = out[:Cout, :M]
    return out.reshape(Cout, N, Do, Ho, Wo).transpose(1, 0, 2, 3, 4)


def _reference(x, w, b, gamma, beta, eps=1e-5, slope=0.2):
    y = lax.conv_general_dilated(
        x, w, window_strides=(1, 1, 1), padding="VALID",
        dimension_numbers=("NCDHW", "OIDHW", "NCDHW"),
        precision=lax.Precision.HIGHEST)
    y = y + b.reshape(1, -1, 1, 1, 1)
    mean = y.mean(axis=(0, 2, 3, 4), keepdims=True)
    var = ((y - mean) ** 2).mean(axis=(0, 2, 3, 4), keepdims=True)
    y = (y - mean) / jnp.sqrt(var + eps)
    y = y * gamma.reshape(1, -1, 1, 1, 1) + beta.reshape(1, -1, 1, 1, 1)
    return jnp.where(y > 0, y, slope * y)


if __name__ == "__main__":
    # Conv3D(in=4, out=8, kernel=3) on a small volume.
    N, Cin, Cout, K = 2, 4, 8, 3
    D = H = W = 8

    key = jax.random.PRNGKey(0)
    kx, kw_, kb = jax.random.split(key, 3)

    x = jax.random.normal(kx, (N, Cin, D, H, W), dtype=jnp.float32)
    fan_in = Cin * K * K * K
    bound = 1.0 / (fan_in ** 0.5)
    w = jax.random.uniform(kw_, (Cout, Cin, K, K, K), jnp.float32, -bound, bound)
    b = jax.random.uniform(kb, (Cout,), jnp.float32, -bound, bound)
    gamma = jnp.ones((Cout,), jnp.float32)
    beta = jnp.zeros((Cout,), jnp.float32)

    y = jax.block_until_ready(conv3d_block(x, w, b, gamma, beta))
    assert y.shape == (N, Cout, D - K + 1, H - K + 1, W - K + 1)

    # Tight check: reference with the same bf16-rounded conv operands as the MXU path.
    ref_bf16 = jax.block_until_ready(_reference(
        x.astype(jnp.bfloat16).astype(jnp.float32),
        w.astype(jnp.bfloat16).astype(jnp.float32), b, gamma, beta))
    assert jnp.allclose(y, ref_bf16, atol=2e-3, rtol=2e-3), "mismatch vs bf16-operand reference"

    # Loose sanity check vs the full-f32 module semantics (bf16 matmul rounding allowed).
    ref_f32 = jax.block_until_ready(_reference(x, w, b, gamma, beta))
    assert jnp.allclose(y, ref_f32, atol=5e-2, rtol=5e-2), "mismatch vs f32 reference"

    print("KERNEL_OK")
</pallas_src>

<mosaic_0001>
module attributes {stable_mosaic.version = 11 : i64} {
  func.func @_conv_stats_kernel(%arg0: i32, %arg1: memref<8x112xbf16, #tpu.memory_space<vmem>>, %arg2: memref<112x512xbf16, #tpu.memory_space<vmem>>, %arg3: memref<8x512xf32, #tpu.memory_space<vmem>>, %arg4: memref<8x128xf32, #tpu.memory_space<vmem>>, %arg5: memref<8x128xf32, #tpu.memory_space<vmem>>) attributes {dimension_semantics = [#tpu.dimension_semantics<parallel>], iteration_bounds = array<i64: 1>, scalar_prefetch = 0 : i64, scratch_operands = 0 : i64, tpu.core_type = #tpu.core_type<tc>, window_params = [{pipeline_mode = #tpu.pipeline_mode<synchronous>, transform_indices = @transform_0, window_bounds = array<i64: 8, 112>}, {transform_indices = @transform_1, window_bounds = array<i64: 112, 512>}, {transform_indices = @transform_2, window_bounds = array<i64: 8, 512>}, {transform_indices = @transform_3, window_bounds = array<i64: 8, 128>}, {transform_indices = @transform_4, window_bounds = array<i64: 8, 128>}]} {
    %c0 = arith.constant 0 : index
    %c0_0 = arith.constant 0 : index
    %0 = vector.load %arg1[%c0, %c0_0] : memref<8x112xbf16, #tpu.memory_space<vmem>>, vector<8x112xbf16>
    %c0_1 = arith.constant 0 : index
    %c0_2 = arith.constant 0 : index
    %1 = vector.load %arg2[%c0_1, %c0_2] : memref<112x512xbf16, #tpu.memory_space<vmem>>, vector<112x512xbf16>
    %cst = arith.constant dense<0.000000e+00> : vector<8x512xf32>
    %2 = tpu.matmul %0, %1, %cst {dimension_numbers = #tpu.dot_dimension_numbers<[1], [0], [0], [1], [0, 0, 1, 1], [], []>} : vector<8x112xbf16>, vector<112x512xbf16>, vector<8x512xf32> -> vector<8x512xf32>
    %c0_3 = arith.constant 0 : index
    %c0_4 = arith.constant 0 : index
    %3 = vector.load %arg3[%c0_3, %c0_4] : memref<8x512xf32, #tpu.memory_space<vmem>>, vector<8x512xf32>
    tpu.vector_store %arg3[%c0_3, %c0_4], %2 {strides = array<i32>} : memref<8x512xf32, #tpu.memory_space<vmem>>, vector<8x512xf32>,
    %cst_5 = arith.constant dense<0.000000e+00> : vector<8xf32>
    %4 = vector.multi_reduction <add>, %2, %cst_5 [1] : vector<8x512xf32> to vector<8xf32>
    %5 = vector.shape_cast %4 : vector<8xf32> to vector<8x1xf32>
    %6 = arith.mulf %2, %2 : vector<8x512xf32>
    %cst_6 = arith.constant dense<0.000000e+00> : vector<8xf32>
    %7 = vector.multi_reduction <add>, %6, %cst_6 [1] : vector<8x512xf32> to vector<8xf32>
    %8 = vector.shape_cast %7 : vector<8xf32> to vector<8x1xf32>
    %9 = vector.shape_cast %5 : vector<8x1xf32> to vector<8x1xf32>
    %10 = vector.broadcast %9 : vector<8x1xf32> to vector<8x128xf32>
    %c0_7 = arith.constant 0 : index
    %c0_8 = arith.constant 0 : index
    %11 = vector.load %arg4[%c0_7, %c0_8] : memref<8x128xf32, #tpu.memory_space<vmem>>, vector<8x128xf32>
    tpu.vector_store %arg4[%c0_7, %c0_8], %10 {strides = array<i32>} : memref<8x128xf32, #tpu.memory_space<vmem>>, vector<8x128xf32>,
    %12 = vector.shape_cast %8 : vector<8x1xf32> to vector<8x1xf32>
    %13 = vector.broadcast %12 : vector<8x1xf32> to vector<8x128xf32>
    %c0_9 = arith.constant 0 : index
    %c0_10 = arith.constant 0 : index
    %14 = vector.load %arg5[%c0_9, %c0_10] : memref<8x128xf32, #tpu.memory_space<vmem>>, vector<8x128xf32>
    tpu.vector_store %arg5[%c0_9, %c0_10], %13 {strides = array<i32>} : memref<8x128xf32, #tpu.memory_space<vmem>>, vector<8x128xf32>,
    return
  }
  func.func @transform_0(%arg0: i32) -> (i32, i32) {
    %c0_i32 = arith.constant 0 : i32
    %c0_i32_0 = arith.constant 0 : i32
    %c0_i32_1 = arith.constant 0 : i32
    return %c0_i32, %c0_i32_0 : i32, i32
  }
  func.func @transform_1(%arg0: i32) -> (i32, i32) {
    %c0_i32 = arith.constant 0 : i32
    %c0_i32_0 = arith.constant 0 : i32
    return %c0_i32, %arg0 : i32, i32
  }
  func.func @transform_2(%arg0: i32) -> (i32, i32) {
    %c0_i32 = arith.constant 0 : i32
    %c0_i32_0 = arith.constant 0 : i32
    return %c0_i32, %arg0 : i32, i32
  }
  func.func @transform_3(%arg0: i32) -> (i32, i32) {
    %c0_i32 = arith.constant 0 : i32
    %c0_i32_0 = arith.constant 0 : i32
    return %arg0, %c0_i32 : i32, i32
  }
  func.func @transform_4(%arg0: i32) -> (i32, i32) {
    %c0_i32 = arith.constant 0 : i32
    %c0_i32_0 = arith.constant 0 : i32
    return %arg0, %c0_i32 : i32, i32
  }
}

</mosaic_0001>

<bundles_post_ra>
// kernel: tpu_custom_call.1
= control target key start
LH: loop header
LB: loop body
LE: loop exit
PB: predicated region body
PF: predicated region fallthrough
CT: control target
= control target key end

     0   :  { %10 = vsyncpa [#allocation3], 0  ;;  %s659_s0 = inlined_call_operand.hbm [shape: bf16[8,112], index: 0, kind: input, shape index: {}]   ;;  %s660_s1 = inlined_call_operand.hbm [shape: bf16[112,512], index: 1, kind: input, shape index: {}]   ;;  %s661_s2 = inlined_call_operand.hbm [shape: f32[8,512], index: 2, kind: output, shape index: {0}]   ;;  %s662_s3 = inlined_call_operand.hbm [shape: f32[8,128], index: 3, kind: output, shape index: {1}]   ;;  %s663_s4 = inlined_call_operand.hbm [shape: f32[8,128], index: 4, kind: output, shape index: {2}]  }
   0x1   :  { %11 = vsyncpa [#allocation6], 0 }
   0x2   :  { %12 = vsyncpa [#allocation4], 0 }
   0x3   :  { %13 = vsyncpa [#allocation9], 0  ;;  %s559_s15 = smov [#allocation2]   ;;  %s560_s17 = smov [#allocation5]  }
   0x4   :  { %s20_s16 = sshll.u32 %s559_s15, 4  ;;  %s29_s18 = sshll.u32 %s560_s17, 4  ;;  %s21_s16 = int_to_ptr.vmem [resolvable:$true] %s20_s16  ;;  %s592_s18 = int_to_ptr.vmem [resolvable:$true] %s29_s18 }
   0x5   :  { %s441_s21 = scalar_lea.hbm %s659_s0, 64 }
   0x6   :  { %p442_p0 = scmp.ne.s32.totalorder %s659_s0, %s441_s21  ;;  %p445_p1 = scmp.lt.u32.totalorder %s441_s21, %s659_s0 }
   0x8   :  { %p447_p2 = pnand %p445_p1, %p442_p0 }
   0xa   :  { %450 = shalt.err (!%p447_p2)
}
   0xb   :  { %s451_s26 = scalar_lea.vmem %s21_s16, 64  ;;  %p456_p4 = scmp.lt.s32.totalorder %s21_s16, %s21_s16 }
   0xc   :  { %p452_p3 = scmp.ne.s32.totalorder %s21_s16, %s451_s26  ;;  %p457_p5 = scmp.lt.s32.totalorder %s451_s26, %s451_s26 }
   0xe   :  { %p458_p6 = por %p457_p5, %p456_p4 }
  0x10   :  { %p459_p7 = pnand %p458_p6, %p452_p3 }
  0x12   :  { %462 = shalt.err (!%p459_p7)
}
  0x13   :  { %23 = dma.hbm_to_vmem [thread:$0]  %s659_s0, 64, %s21_s16, [#allocation3]  }
  0x14   :  { %s463_s5 = scalar_lea.hbm %s660_s1, 3584 }
  0x15   :  { %p464_p8 = scmp.ne.s32.totalorder %s660_s1, %s463_s5  ;;  %p467_p9 = scmp.lt.u32.totalorder %s463_s5, %s660_s1 }
  0x17   :  { %p469_p10 = pnand %p467_p9, %p464_p8 }
  0x19   :  { %472 = shalt.err (!%p469_p10)
}
  0x1a   :  { %s473_s10 = scalar_lea.vmem %s592_s18, 3584  ;;  %p478_p12 = scmp.lt.s32.totalorder %s592_s18, %s592_s18 }
  0x1b   :  { %p474_p11 = scmp.ne.s32.totalorder %s592_s18, %s473_s10  ;;  %p479_p13 = scmp.lt.s32.totalorder %s473_s10, %s473_s10 }
  0x1d   :  { %p480_p0 = por %p479_p13, %p478_p12 }
  0x1f   :  { %p481_p1 = pnand %p480_p0, %p474_p11 }
  0x21   :  { %484 = shalt.err (!%p481_p1)
}
  0x22   :  { %s561_s0 = smov 256   ;;  %s562_s11 = smov 16  }
  0x23   :  { %35 = dma.hbm_to_vmem [thread:$0]  %s660_s1, 3584, %s592_s18, [#allocation6], %s561_s0, %s561_s0, %s562_s11  }
  0x24   :  { %551 = dma.done.wait [#allocation3], 64  }
  0x25   :  { %552 = vsyncadd [#allocation3], 4294967232 }
  0x26   :  { %553 = dma.done.wait [#allocation6], 3584  }
  0x27   :  { %554 = vsyncadd [#allocation6], 4294963712  ;;  %v563_v0 = vmov 0   ;;  %v399_v1 = vld [vmem:[#allocation5 + $0x4] ss:$16 sps:$4 sm:$0xff]   ;;  %vm212_vm0 = vcmask 916480  }
  0x28   :  { %248 = vmatprep.mubr.bf16.mxu0 %v563_v0  ;;  %289 = vmatprep.mubr.bf16.mxu1 %v563_v0  ;;  %v401_v2 = vld [vmem:[#allocation5 + $0xc] ss:$16 sps:$4 sm:$0xff]   ;;  %v403_v3 = vld [vmem:[#allocation5] ss:$16 sps:$4 sm:$0xff]   ;;  %v404_v4 = vld [vmem:[#allocation5 + $0x8] ss:$16 sps:$4 sm:$0xff]  }
  0x29   :  { %216 = vmatprep.subr.bf16.mxu0 %v399_v1  ;;  %257 = vmatprep.subr.bf16.mxu1 %v401_v2  ;;  %v405_v5 = vld [vmem:[#allocation5 + $0x24] ss:$16 sps:$4 sm:$0xff]   ;;  %v407_v6 = vld [vmem:[#allocation5 + $0x2c] ss:$16 sps:$4 sm:$0xff]   ;;  %v409_v7 = vld [vmem:[#allocation5 + $0x20] ss:$16 sps:$4 sm:$0xff]  }
  0x2a   :  { %217 = vmatpush1.bf16.msra.mxu0 %v403_v3  ;;  %258 = vmatpush1.bf16.msra.mxu1 %v404_v4  ;;  %v410_v8 = vld [vmem:[#allocation5 + $0x28] ss:$16 sps:$4 sm:$0xff]   ;;  %v411_v9 = vld [vmem:[#allocation5 + $0x44] ss:$16 sps:$4 sm:$0xff]   ;;  %v413_v10 = vld [vmem:[#allocation5 + $0x4c] ss:$16 sps:$4 sm:$0xff]  }
  0x2b   :  { %218 = vmatprep.subr.bf16.mxu0 %v405_v5  ;;  %259 = vmatprep.subr.bf16.mxu1 %v407_v6  ;;  %v415_v11 = vld [vmem:[#allocation5 + $0x40] ss:$16 sps:$4 sm:$0xff]   ;;  %v416_v12 = vld [vmem:[#allocation5 + $0x48] ss:$16 sps:$4 sm:$0xff]   ;;  %v417_v13 = vld [vmem:[#allocation5 + $0x64] ss:$16 sps:$4 sm:$0xff]  }
  0x2c   :  { %v419_v14 = vld [vmem:[#allocation5 + $0x6c] ss:$16 sps:$4 sm:$0xff]   ;;  %v421_v15 = vld [vmem:[#allocation5 + $0x60] ss:$16 sps:$4 sm:$0xff]   ;;  %v422_v16 = vld [vmem:[#allocation5 + $0x68] ss:$16 sps:$4 sm:$0xff]  }
  0x2d   :  { %v423_v17 = vld [vmem:[#allocation5 + $0x84] ss:$16 sps:$4 sm:$0xff]   ;;  %v425_v18 = vld [vmem:[#allocation5 + $0x8c] ss:$16 sps:$4 sm:$0xff]   ;;  %v427_v19 = vld [vmem:[#allocation5 + $0x80] ss:$16 sps:$4 sm:$0xff]  }
  0x2e   :  { %219 = vmatpush1.bf16.msra.mxu0 %v409_v7  ;;  %260 = vmatpush1.bf16.msra.mxu1 %v410_v8  ;;  %v428_v20 = vld [vmem:[#allocation5 + $0x88] ss:$16 sps:$4 sm:$0xff]   ;;  %v429_v21 = vld [vmem:[#allocation5 + $0xa4] ss:$16 sps:$4 sm:$0xff]   ;;  %v431_v22 = vld [vmem:[#allocation5 + $0xac] ss:$16 sps:$4 sm:$0xff]  }
  0x2f   :  { %220 = vmatprep.subr.bf16.mxu0 %v411_v9  ;;  %261 = vmatprep.subr.bf16.mxu1 %v413_v10  ;;  %v433_v23 = vld [vmem:[#allocation5 + $0xa0] ss:$16 sps:$4 sm:$0xff]   ;;  %v434_v24 = vld [vmem:[#allocation5 + $0xa8] ss:$16 sps:$4 sm:$0xff]   ;;  %v435_v25 = vld [vmem:[#allocation5 + $0xc4] ss:$16 sps:$4 sm:$0xff]  }
  0x30   :  { %v437_v26 = vld [vmem:[#allocation5 + $0xcc] ss:$16 sps:$4 sm:$0xff]   ;;  %v439_v27 = vld [vmem:[#allocation5 + $0xc0] ss:$16 sps:$4 sm:$0xff]   ;;  %v440_v28 = vld [vmem:[#allocation5 + $0xc8] ss:$16 sps:$4 sm:$0xff]  }
  0x31   :  { %v43_v29 = vld [vmem:[#allocation2] sm:$0xf]  ;;  %s564_s1 = smov [#allocation7]  }
  0x32   :  { %221 = vmatpush1.bf16.msra.mxu0 %v415_v11  ;;  %262 = vmatpush1.bf16.msra.mxu1 %v416_v12  ;;  %s324_s14 = sshll.u32 %s564_s1, 4  ;;  %s325_s14 = int_to_ptr.vmem [resolvable:$true] %s324_s14 }
  0x33   :  { %222 = vmatprep.subr.bf16.mxu0 %v417_v13  ;;  %263 = vmatprep.subr.bf16.mxu1 %v419_v14  ;;  %s485_s15 = scalar_lea.vmem %s325_s14, 512  ;;  %p490_p3 = scmp.lt.s32.totalorder %s325_s14, %s325_s14 }
  0x34   :  { %p486_p2 = scmp.ne.s32.totalorder %s325_s14, %s485_s15  ;;  %p491_p4 = scmp.lt.s32.totalorder %s485_s15, %s485_s15 }
  0x36   :  { %223 = vmatpush1.bf16.msra.mxu0 %v421_v15  ;;  %264 = vmatpush1.bf16.msra.mxu1 %v422_v16  ;;  %p492_p5 = por %p491_p4, %p490_p3 }
  0x37   :  { %224 = vmatprep.subr.bf16.mxu0 %v423_v17  ;;  %265 = vmatprep.subr.bf16.mxu1 %v425_v18 }
  0x38   :  { %p493_p6 = pnand %p492_p5, %p486_p2 }
  0x3a   :  { %225 = vmatpush1.bf16.msra.mxu0 %v427_v19  ;;  %266 = vmatpush1.bf16.msra.mxu1 %v428_v20 }
  0x3b   :  { %226 = vmatprep.subr.bf16.mxu0 %v429_v21  ;;  %267 = vmatprep.subr.bf16.mxu1 %v431_v22 }
  0x3e   :  { %227 = vmatpush1.bf16.msra.mxu0 %v433_v23  ;;  %268 = vmatpush1.bf16.msra.mxu1 %v434_v24 }
  0x3f   :  { %228 = vmatprep.subr.bf16.mxu0 %v435_v25  ;;  %269 = vmatprep.subr.bf16.mxu1 %v437_v26 }
  0x42   :  { %229 = vmatpush1.bf16.msra.mxu0 %v439_v27  ;;  %270 = vmatpush1.bf16.msra.mxu1 %v440_v28 }
  0x45   :  { %389 = vmatmul.mubr.msk.bf16.vlgmr.msra.gmra.mrb[0].mxu0 %vm212_vm0, %v43_v29  ;;  %390 = vmatmul.mubr.msk.bf16.vlgmr.msra.gmra.mrb[0].mxu1 %vm212_vm0, %v43_v29 }
 0x118   :  { %v250_v30 = vpop.f32.mrb[0].mxu0  ;;  %v291_v31 = vpop.f32.mrb[0].mxu1 }
 0x119   :  { %298 = vst [vmem:[#allocation7] sm:$0xff] %v250_v30  ;;  %v307_v32 = vmul.f32 %v250_v30, %v250_v30  ;;  %300 = vst [vmem:[#allocation7 + $0x10] sm:$0xff] %v291_v31  ;;  %v252_v33 = vpop.f32.mrb[1].mxu0  ;;  %v293_v34 = vpop.f32.mrb[1].mxu1  ;;  %v309_v35 = vmul.f32 %v291_v31, %v291_v31 }
 0x11a   :  { %299 = vst [vmem:[#allocation7 + $0x8] sm:$0xff] %v252_v33  ;;  %v302_v36 = vadd.f32 %v252_v33, %v250_v30  ;;  %v308_v37 = vmul.f32 %v252_v33, %v252_v33  ;;  %301 = vst [vmem:[#allocation7 + $0x18] sm:$0xff] %v293_v34  ;;  %v254_v38 = vpop.f32.mrb[2].mxu0  ;;  %v295_v39 = vpop.f32.mrb[2].mxu1  ;;  %v310_v45 = vmul.f32 %v293_v34, %v293_v34 }
 0x11b   :  { %v255_v40 = vpop.f32.mrb[3].mxu0  ;;  %v296_v41 = vpop.f32.mrb[3].mxu1 }
 0x11c   :  { %v303_v42 = vadd.f32 %v302_v36, %v291_v31  ;;  %v311_v43 = vadd.f32 %v308_v37, %v307_v32 }
 0x11e   :  { %v304_v44 = vadd.f32 %v303_v42, %v293_v34  ;;  %v312_v46 = vadd.f32 %v311_v43, %v309_v35 }
 0x120   :  { %305 = vadd.xlane.f32.xlu0 %v304_v44  ;;  %v313_v47 = vadd.f32 %v312_v46, %v310_v45 }
 0x124   :  { %314 = vadd.xlane.f32.xlu0 %v313_v47 }
 0x125   :  { %496 = shalt.err (!%p493_p6)
}
 0x126   :  { %s497_s18 = scalar_lea.hbm %s661_s2, 512 }
 0x127   :  { %p498_p7 = scmp.ne.s32.totalorder %s661_s2, %s497_s18  ;;  %p501_p8 = scmp.lt.u32.totalorder %s497_s18, %s661_s2 }
 0x129   :  { %p503_p9 = pnand %p501_p8, %p498_p7 }
 0x12b   :  { %506 = shalt.err (!%p503_p9)
}
 0x12c   :  { %327 = dma.vmem_to_hbm [thread:$0]  %s325_s14, 512, %s661_s2, [#allocation4]  }
 0x12d   :  { %s565_s25 = smov [#allocation8]   ;;  %s566_s27 = smov [#allocation10]  }
 0x12e   :  { %s334_s26 = sshll.u32 %s565_s25, 4  ;;  %s344_s28 = sshll.u32 %s566_s27, 4  ;;  %s335_s26 = int_to_ptr.vmem [resolvable:$true] %s334_s26  ;;  %s345_s28 = int_to_ptr.vmem [resolvable:$true] %s344_s28 }
 0x12f   :  { %s507_s29 = scalar_lea.vmem %s335_s26, 128  ;;  %p512_p11 = scmp.lt.s32.totalorder %s335_s26, %s335_s26 }
 0x130   :  { %p508_p10 = scmp.ne.s32.totalorder %s335_s26, %s507_s29  ;;  %p513_p12 = scmp.lt.s32.totalorder %s507_s29, %s507_s29 }
 0x132   :  { %p514_p13 = por %p513_p12, %p512_p11 }
 0x134   :  { %p515_p0 = pnand %p514_p13, %p508_p10 }
 0x1ad   :  { %v306_v48 = vpop.xlane.xlu0 %305 }
 0x1ae   :  { %316 = vst [vmem:[#allocation8] sm:$0xff] %v306_v48 }
 0x1af   :  { %518 = shalt.err (!%p515_p0)
}
 0x1b0   :  { %s519_s6 = scalar_lea.hbm %s662_s3, 128 }
 0x1b1   :  { %p520_p1 = scmp.ne.s32.totalorder %s662_s3, %s519_s6  ;;  %p523_p2 = scmp.lt.u32.totalorder %s519_s6, %s662_s3 }
 0x1b3   :  { %p525_p3 = pnand %p523_p2, %p520_p1 }
 0x1b5   :  { %528 = shalt.err (!%p525_p3)
}
 0x1b6   :  { %337 = dma.vmem_to_hbm [thread:$0]  %s335_s26, 128, %s662_s3, [#allocation9]   ;;  %v315_v49 = vpop.xlane.xlu0 %314 }
 0x1b7   :  { %317 = vst [vmem:[#allocation10] sm:$0xff] %v315_v49  ;;  %s529_s11 = scalar_lea.vmem %s345_s28, 128  ;;  %p534_p5 = scmp.lt.s32.totalorder %s345_s28, %s345_s28 }
 0x1b8   :  { %p530_p4 = scmp.ne.s32.totalorder %s345_s28, %s529_s11  ;;  %p535_p6 = scmp.lt.s32.totalorder %s529_s11, %s529_s11 }
 0x1ba   :  { %p536_p7 = por %p535_p6, %p534_p5 }
 0x1bc   :  { %p537_p8 = pnand %p536_p7, %p530_p4 }
 0x1be   :  { %540 = shalt.err (!%p537_p8)
}
 0x1bf   :  { %s541_s1 = scalar_lea.hbm %s663_s4, 128 }
 0x1c0   :  { %p542_p9 = scmp.ne.s32.totalorder %s663_s4, %s541_s1  ;;  %p545_p10 = scmp.lt.u32.totalorder %s541_s1, %s663_s4 }
 0x1c2   :  { %p547_p11 = pnand %p545_p10, %p542_p9 }
 0x1c4   :  { %550 = shalt.err (!%p547_p11)
}
 0x1c5   :  { %347 = dma.vmem_to_hbm [thread:$0]  %s345_s28, 128, %s663_s4, [#allocation9]  }
 0x1c6   :  { %555 = dma.done.wait [#allocation4], 512  }
 0x1c7   :  { %556 = vsyncadd [#allocation4], 4294966784 }
 0x1c8   :  { %557 = dma.done.wait [#allocation9], 256  }
 0x1c9   :  { %558 = vsyncadd [#allocation9], 4294967040 }
 0x1ca   :  { %357 = vsyncpa [#allocation3], 1 }
 0x1cb   :  { %358 = vsyncpa [#allocation6], 1 }
 0x1cc   :  { %359 = vsyncpa [#allocation4], 1 }
 0x1cd   :  { %360 = vsyncpa [#allocation9], 1 }

</bundles_post_ra>
